<compile_context>
chip_gen: v6e
topology: v6e:2x2x1
jax: 0.10.0
libtpu: 0.0.40
codegen_flags: <defaults>
</compile_context>

<pallas_src>
import jax
import jax.numpy as jnp
from jax.experimental import pallas as pl
from jax.experimental.pallas import tpu as pltpu


def policy_mlp_kernel(x_ref, w1_ref, b1_ref, w2_ref, b2_ref, w3_ref, b3_ref, o_ref):
    x = x_ref[...]

    # Layer 1: Linear(S, 128) + LeakyReLU(0.01)
    h1 = jnp.dot(x, w1_ref[...], preferred_element_type=jnp.float32) + b1_ref[...]
    h1 = jnp.where(h1 > 0, h1, 0.01 * h1)

    # Layer 2: Linear(128, 128) + ReLU
    h2 = jnp.dot(h1, w2_ref[...], preferred_element_type=jnp.float32) + b2_ref[...]
    h2 = jnp.maximum(h2, 0.0)

    # Layer 3: Linear(128, A)
    out = jnp.dot(h2, w3_ref[...], preferred_element_type=jnp.float32) + b3_ref[...]
    o_ref[...] = out.astype(o_ref.dtype)


def _round_up(n, m):
    return ((n + m - 1) // m) * m


def policy_network_forward(x, w1, b1, w2, b2, w3, b3, *, batch_tile=4096):
    """Forward pass of the policy MLP as a single batch-tiled Pallas kernel.

    x:  (B, S) float32
    w1: (S, 128),   b1: (1, 128)
    w2: (128, 128), b2: (1, 128)
    w3: (128, A),   b3: (1, A)
    returns (B, A) float32
    """
    B, S = x.shape
    A = w3.shape[1]

    # Batch tile: multiple of 8 sublanes, capped at batch_tile.  If the whole
    # batch would fit in a single tile, split it in two so the "parallel" grid
    # axis can shard batch tiles across v7x's two TensorCores.
    tb = min(batch_tile, _round_up(B, 8))
    if tb >= B and B > 8:
        tb = _round_up(-(-B // 2), 8)
    tb = max(8, _round_up(tb, 8))

    grid = (pl.cdiv(B, tb),)  # ragged last tile handled by Pallas (masked writeback)

    def resident(shape):
        # Constant index_map => block index never changes => weights are DMA'd
        # once and stay VMEM-resident across all batch tiles.
        return pl.BlockSpec(shape, lambda i: (0, 0))

    out = pl.pallas_call(
        policy_mlp_kernel,
        out_shape=jax.ShapeDtypeStruct((B, A), jnp.float32),
        grid=grid,
        in_specs=[
            pl.BlockSpec((tb, S), lambda i: (i, 0)),   # streamed input tiles
            resident((S, 128)),   resident((1, 128)),
            resident((128, 128)), resident((1, 128)),
            resident((128, A)),   resident((1, A)),
        ],
        out_specs=pl.BlockSpec((tb, A), lambda i: (i, 0)),
        compiler_params=pltpu.CompilerParams(
            dimension_semantics=("parallel",),     # shard batch tiles across TCs (v7x)
            vmem_limit_bytes=32 * 1024 * 1024,     # needed on v5e, safe on v7x (64 MiB)
        ),
    )(x, w1, b1, w2, b2, w3, b3)

    return out


def init_params(key, num_state_vars, num_action_options):
    """PyTorch-Linear-style init; weights stored as (in, out) for y = x @ W + b."""
    k1, k2, k3, k4, k5, k6 = jax.random.split(key, 6)

    def uniform(k, shape, fan_in):
        bound = 1.0 / jnp.sqrt(jnp.float32(fan_in))
        return jax.random.uniform(k, shape, jnp.float32, -bound, bound)

    w1 = uniform(k1, (num_state_vars, 128), num_state_vars)
    b1 = uniform(k2, (1, 128), num_state_vars)
    w2 = uniform(k3, (128, 128), 128)
    b2 = uniform(k4, (1, 128), 128)
    w3 = uniform(k5, (128, num_action_options), 128)
    b3 = uniform(k6, (1, num_action_options), 128)
    return w1, b1, w2, b2, w3, b3


def reference_forward_f32(x, w1, b1, w2, b2, w3, b3):
    h1 = x @ w1 + b1
    h1 = jnp.where(h1 > 0, h1, 0.01 * h1)
    h2 = jnp.maximum(h1 @ w2 + b2, 0.0)
    return h2 @ w3 + b3


if __name__ == "__main__":
    num_state_vars = 32
    num_action_options = 16
    batch = 200   # not a multiple of the tile -> exercises the ragged last block

    key = jax.random.PRNGKey(0)
    kx, kp = jax.random.split(key)
    x = jax.random.normal(kx, (batch, num_state_vars), jnp.float32)
    params = init_params(kp, num_state_vars, num_action_options)

    # Small explicit tile: multi-step grid + ragged last tile.
    out_small = policy_network_forward(x, *params, batch_tile=64)
    out_small = jax.block_until_ready(out_small)
    assert out_small.shape == (batch, num_action_options)

    # Default (large) tile: exercises the split-into-two-tiles megacore path.
    out_big = policy_network_forward(x, *params)
    out_big = jax.block_until_ready(out_big)
    assert out_big.shape == (batch, num_action_options)

    # Reference check (tolerance covers XLA's default TPU matmul precision).
    ref = reference_forward_f32(x, *params)
    assert jnp.allclose(out_small, ref, atol=5e-2, rtol=5e-2), (
        float(jnp.max(jnp.abs(out_small - ref))))
    assert jnp.allclose(out_big, ref, atol=5e-2, rtol=5e-2), (
        float(jnp.max(jnp.abs(out_big - ref))))

    print("KERNEL_OK")
</pallas_src>

<mosaic_0001>
module attributes {stable_mosaic.version = 11 : i64} {
  func.func @policy_mlp_kernel(%arg0: i32, %arg1: memref<64x32xf32, #tpu.memory_space<vmem>>, %arg2: memref<32x128xf32, #tpu.memory_space<vmem>>, %arg3: memref<1x128xf32, #tpu.memory_space<vmem>>, %arg4: memref<128x128xf32, #tpu.memory_space<vmem>>, %arg5: memref<1x128xf32, #tpu.memory_space<vmem>>, %arg6: memref<128x16xf32, #tpu.memory_space<vmem>>, %arg7: memref<1x16xf32, #tpu.memory_space<vmem>>, %arg8: memref<64x16xf32, #tpu.memory_space<vmem>>) attributes {dimension_semantics = [#tpu.dimension_semantics<parallel>], iteration_bounds = array<i64: 4>, scalar_prefetch = 0 : i64, scratch_operands = 0 : i64, tpu.core_type = #tpu.core_type<tc>, window_params = [{transform_indices = @transform_0, window_bounds = array<i64: 64, 32>}, {pipeline_mode = #tpu.pipeline_mode<synchronous>, transform_indices = @transform_1, window_bounds = array<i64: 32, 128>}, {pipeline_mode = #tpu.pipeline_mode<synchronous>, transform_indices = @transform_2, window_bounds = array<i64: 1, 128>}, {pipeline_mode = #tpu.pipeline_mode<synchronous>, transform_indices = @transform_3, window_bounds = array<i64: 128, 128>}, {pipeline_mode = #tpu.pipeline_mode<synchronous>, transform_indices = @transform_4, window_bounds = array<i64: 1, 128>}, {pipeline_mode = #tpu.pipeline_mode<synchronous>, transform_indices = @transform_5, window_bounds = array<i64: 128, 16>}, {pipeline_mode = #tpu.pipeline_mode<synchronous>, transform_indices = @transform_6, window_bounds = array<i64: 1, 16>}, {transform_indices = @transform_7, window_bounds = array<i64: 64, 16>}]} {
    %c0 = arith.constant 0 : index
    %c0_0 = arith.constant 0 : index
    %0 = vector.load %arg1[%c0, %c0_0] : memref<64x32xf32, #tpu.memory_space<vmem>>, vector<64x32xf32>
    %c0_1 = arith.constant 0 : index
    %c0_2 = arith.constant 0 : index
    %1 = vector.load %arg2[%c0_1, %c0_2] : memref<32x128xf32, #tpu.memory_space<vmem>>, vector<32x128xf32>
    %cst = arith.constant dense<0.000000e+00> : vector<64x128xf32>
    %2 = tpu.matmul %0, %1, %cst {dimension_numbers = #tpu.dot_dimension_numbers<[1], [0], [0], [1], [0, 0, 1, 1], [], []>} : vector<64x32xf32>, vector<32x128xf32>, vector<64x128xf32> -> vector<64x128xf32>
    %c0_3 = arith.constant 0 : index
    %c0_4 = arith.constant 0 : index
    %3 = vector.load %arg3[%c0_3, %c0_4] : memref<1x128xf32, #tpu.memory_space<vmem>>, vector<1x128xf32>
    %4 = vector.broadcast %3 : vector<1x128xf32> to vector<64x128xf32>
    %5 = arith.addf %2, %4 : vector<64x128xf32>
    %cst_5 = arith.constant 0.000000e+00 : f32
    %6 = vector.broadcast %cst_5 : f32 to vector<64x128xf32>
    %7 = arith.cmpf ogt, %5, %6 : vector<64x128xf32>
    %cst_6 = arith.constant 0.00999999977 : f32
    %8 = vector.broadcast %cst_6 : f32 to vector<64x128xf32>
    %9 = arith.mulf %8, %5 : vector<64x128xf32>
    %10 = arith.select %7, %5, %9 : vector<64x128xi1>, vector<64x128xf32>
    %c0_7 = arith.constant 0 : index
    %c0_8 = arith.constant 0 : index
    %11 = vector.load %arg4[%c0_7, %c0_8] : memref<128x128xf32, #tpu.memory_space<vmem>>, vector<128x128xf32>
    %cst_9 = arith.constant dense<0.000000e+00> : vector<64x128xf32>
    %12 = tpu.matmul %10, %11, %cst_9 {dimension_numbers = #tpu.dot_dimension_numbers<[1], [0], [0], [1], [0, 0, 1, 1], [], []>} : vector<64x128xf32>, vector<128x128xf32>, vector<64x128xf32> -> vector<64x128xf32>
    %c0_10 = arith.constant 0 : index
    %c0_11 = arith.constant 0 : index
    %13 = vector.load %arg5[%c0_10, %c0_11] : memref<1x128xf32, #tpu.memory_space<vmem>>, vector<1x128xf32>
    %14 = vector.broadcast %13 : vector<1x128xf32> to vector<64x128xf32>
    %15 = arith.addf %12, %14 : vector<64x128xf32>
    %cst_12 = arith.constant 0.000000e+00 : f32
    %16 = vector.broadcast %cst_12 : f32 to vector<64x128xf32>
    %17 = arith.maximumf %15, %16 : vector<64x128xf32>
    %c0_13 = arith.constant 0 : index
    %c0_14 = arith.constant 0 : index
    %18 = vector.load %arg6[%c0_13, %c0_14] : memref<128x16xf32, #tpu.memory_space<vmem>>, vector<128x16xf32>
    %cst_15 = arith.constant dense<0.000000e+00> : vector<64x16xf32>
    %19 = tpu.matmul %17, %18, %cst_15 {dimension_numbers = #tpu.dot_dimension_numbers<[1], [0], [0], [1], [0, 0, 1, 1], [], []>} : vector<64x128xf32>, vector<128x16xf32>, vector<64x16xf32> -> vector<64x16xf32>
    %c0_16 = arith.constant 0 : index
    %c0_17 = arith.constant 0 : index
    %20 = vector.load %arg7[%c0_16, %c0_17] : memref<1x16xf32, #tpu.memory_space<vmem>>, vector<1x16xf32>
    %21 = vector.broadcast %20 : vector<1x16xf32> to vector<64x16xf32>
    %22 = arith.addf %19, %21 : vector<64x16xf32>
    %c0_18 = arith.constant 0 : index
    %c0_19 = arith.constant 0 : index
    %23 = vector.load %arg8[%c0_18, %c0_19] : memref<64x16xf32, #tpu.memory_space<vmem>>, vector<64x16xf32>
    tpu.vector_store %arg8[%c0_18, %c0_19], %22 {strides = array<i32>} : memref<64x16xf32, #tpu.memory_space<vmem>>, vector<64x16xf32>,
    return
  }
  func.func @transform_0(%arg0: i32) -> (i32, i32) {
    %c0_i32 = arith.constant 0 : i32
    %c0_i32_0 = arith.constant 0 : i32
    return %arg0, %c0_i32 : i32, i32
  }
  func.func @transform_1(%arg0: i32) -> (i32, i32) {
    %c0_i32 = arith.constant 0 : i32
    %c0_i32_0 = arith.constant 0 : i32
    %c0_i32_1 = arith.constant 0 : i32
    return %c0_i32, %c0_i32_0 : i32, i32
  }
  func.func @transform_2(%arg0: i32) -> (i32, i32) {
    %c0_i32 = arith.constant 0 : i32
    %c0_i32_0 = arith.constant 0 : i32
    %c0_i32_1 = arith.constant 0 : i32
    return %c0_i32, %c0_i32_0 : i32, i32
  }
  func.func @transform_3(%arg0: i32) -> (i32, i32) {
    %c0_i32 = arith.constant 0 : i32
    %c0_i32_0 = arith.constant 0 : i32
    %c0_i32_1 = arith.constant 0 : i32
    return %c0_i32, %c0_i32_0 : i32, i32
  }
  func.func @transform_4(%arg0: i32) -> (i32, i32) {
    %c0_i32 = arith.constant 0 : i32
    %c0_i32_0 = arith.constant 0 : i32
    %c0_i32_1 = arith.constant 0 : i32
    return %c0_i32, %c0_i32_0 : i32, i32
  }
  func.func @transform_5(%arg0: i32) -> (i32, i32) {
    %c0_i32 = arith.constant 0 : i32
    %c0_i32_0 = arith.constant 0 : i32
    %c0_i32_1 = arith.constant 0 : i32
    return %c0_i32, %c0_i32_0 : i32, i32
  }
  func.func @transform_6(%arg0: i32) -> (i32, i32) {
    %c0_i32 = arith.constant 0 : i32
    %c0_i32_0 = arith.constant 0 : i32
    %c0_i32_1 = arith.constant 0 : i32
    return %c0_i32, %c0_i32_0 : i32, i32
  }
  func.func @transform_7(%arg0: i32) -> (i32, i32) {
    %c0_i32 = arith.constant 0 : i32
    %c0_i32_0 = arith.constant 0 : i32
    return %arg0, %c0_i32 : i32, i32
  }
}

</mosaic_0001>

<bundles_post_ra>
// kernel: tpu_custom_call.1
= control target key start
LH: loop header
LB: loop body
LE: loop exit
PB: predicated region body
PF: predicated region fallthrough
CT: control target
= control target key end

     0   :  { %s1412_s24 = smov 0   ;;  %s1414_s25 = smov 0   ;;  %s1664_s0 = inlined_call_operand.vmem [shape: f32[200,32], index: 0, kind: input, shape index: {}]   ;;  %s1665_s1 = inlined_call_operand.vmem [shape: f32[32,128], index: 1, kind: input, shape index: {}]   ;;  %s1666_s2 = inlined_call_operand.vmem [shape: f32[1,128], index: 2, kind: input, shape index: {}]   ;;  %s1667_s3 = inlined_call_operand.vmem [shape: f32[128,128], index: 3, kind: input, shape index: {}]   ;;  %s1668_s4 = inlined_call_operand.vmem [shape: f32[1,128], index: 4, kind: input, shape index: {}]   ;;  %s1669_s5 = inlined_call_operand.vmem [shape: f32[128,16], index: 5, kind: input, shape index: {}]   ;;  %s1670_s6 = inlined_call_operand.vmem [shape: f32[1,16], index: 6, kind: input, shape index: {}]   ;;  %s1671_s7 = inlined_call_operand.vmem [shape: f32[200,16], index: 7, kind: output, shape index: {}]  }
   0x1   :  { %s1416_s26 = smov 0  }
   0x2 LB: > { %s1425_s27 = sadd.s32 4294967295, %s1338_s26   ;;  %s1427_s28 = sadd.s32 1, %s1338_s26   ;;  %s1338_s26 = sphi %s1416_s26, %s1678_s26   ;;  %s1334_s25 = sphi %s1414_s25, %s1677_s25   ;;  %s1330_s24 = sphi %s1412_s24, %s1676_s24  }
   0x3   : > { %s173_s29 = ssub.s32 %s1338_s26, %s1427_s28  ;;  %s176_s30 = sadd.s32 1, %s1334_s25 }
   0x4   : > { %p174_p0 = scmp.eq.s32.totalorder %s173_s29, 0  ;;  %p186_p1 = scmp.ne.s32.totalorder %s1334_s25, %s1330_s24 }
   0x5   : > { %p187_p2 = scmp.eq.s32.totalorder %s1425_s27, 3  ;;  %p993_p3 = scmp.ge.s32.totalorder %s1338_s26, 1 }
   0x6   : > { %s1435_s8 = scalar_select %p174_p0, %s1334_s25, %s176_s30  }
   0x7   : > { %p1437_p4 = por %p187_p2, %p186_p1  ;;  %p246_p5 = scmp.lt.s32.totalorder %s1338_s26, 5 }
   0x9   : > { %p247_p6 = pnand %p993_p3, %p246_p5 }
   0xa   : > { %s1448_s14 = sshll.u32 (!%p247_p6), %s1425_s27, 3  ;;  %s278_s11 = sand.u32 (!%p247_p6), 1, %s1330_s24  }
   0xb   : > { %250 = sbr.rel (%p247_p6) target bundleno = 675 (0x2a3), region = 48  ;;  %p286_p7 = scmp.lt.s32.totalorder (!%p247_p6), %s1448_s14, 24 }
   0xc   : > { %s994_s13 = sshll.u32 (!%p247_p6), %s278_s11, 6 }
  0x10   : > { %v311_v0 = vld [vmem:[%s1665_s1 + $0x18] sm:$0xff]  ;;  %v310_v1 = vld [vmem:[%s1665_s1 + $0x10] sm:$0xff]  ;;  %v309_v4 = vld [vmem:[%s1665_s1 + $0x8] sm:$0xff]  ;;  %s287_s21 = scalar_select %p286_p7, %s1448_s14, 24  ;;  %vm319_vm0 = vcmask 261120   ;;  %vm737_vm9 = vcmask 130048  }
  0x11   : > { %1088 = vmatprep.subr.mxu0 %v311_v0  ;;  %v488_v2 = vld [vmem:[%s1667_s3 + $0x78] sm:$0xff]  ;;  %v487_v3 = vld [vmem:[%s1667_s3 + $0x70] sm:$0xff]  ;;  %v486_v5 = vld [vmem:[%s1667_s3 + $0x68] sm:$0xff]  ;;  %s754_s24 = ssub.s32 (%p1437_p4), 25, %s1448_s14  ;;  %s1025_s17 = sshll.u32 (%p1437_p4), %s1425_s27, 6 }
  0x12   : > { %1089 = vmatpush3.msra.mxu0 %v311_v0  ;;  %1108 = vmatprep.subr.mxu1 %v488_v2  ;;  %v308_v6 = vld [vmem:[%s1665_s1] sm:$0xff]  ;;  %s996_s30 = sshll.u32 %s287_s21, 3  ;;  %v484_v11 = vld [vmem:[%s1667_s3 + $0x58] sm:$0xff]  ;;  %v483_v13 = vld [vmem:[%s1667_s3 + $0x50] sm:$0xff]  ;;  %p755_p8 = scmp.lt.s32.totalorder (%p1437_p4), %s754_s24, 8 }
  0x13   : > { %1090 = vmatprep.subr.mxu0 %v310_v1  ;;  %1109 = vmatpush3.msra.mxu1 %v488_v2  ;;  %s1470_s12 = scalar_lea.vmem %s1664_s0, %s996_s30  ;;  %v485_v7 = vld [vmem:[%s1667_s3 + $0x60] sm:$0xff]  ;;  %v482_v15 = vld [vmem:[%s1667_s3 + $0x48] sm:$0xff]  ;;  %v480_v19 = vld [vmem:[%s1667_s3 + $0x38] sm:$0xff]  ;;  %s1610_s20 = scalar_lea.vmem (%p1437_p4), %s1671_s7, %s1025_s17  }
  0x14   : > { %1091 = vmatpush3.msra.mxu0 %v310_v1  ;;  %1110 = vmatprep.subr.mxu1 %v487_v3  ;;  %v300_v8 = vld [vmem:[%s1470_s12] sm:$0xff]  ;;  %v301_v9 = vld [vmem:[%s1470_s12 + $0x8] sm:$0xff]  ;;  %v302_v10 = vld [vmem:[%s1470_s12 + $0x10] sm:$0xff] }
  0x15   : > { %1092 = vmatprep.subr.mxu0 %v309_v4  ;;  %1111 = vmatpush3.msra.mxu1 %v487_v3  ;;  %v303_v12 = vld [vmem:[%s1470_s12 + $0x18] sm:$0xff]  ;;  %v304_v14 = vld [vmem:[%s1470_s12 + $0x20] sm:$0xff]  ;;  %v305_v16 = vld [vmem:[%s1470_s12 + $0x28] sm:$0xff] }
  0x16   : > { %1093 = vmatpush3.msra.mxu0 %v309_v4  ;;  %1112 = vmatprep.subr.mxu1 %v486_v5  ;;  %v481_v17 = vld [vmem:[%s1667_s3 + $0x40] sm:$0xff]  ;;  %v306_v18 = vld [vmem:[%s1470_s12 + $0x30] sm:$0xff]  ;;  %v307_v20 = vld [vmem:[%s1470_s12 + $0x38] sm:$0xff]  ;;  %s1585_s12 = scalar_lea.vmem [#allocation2], %s994_s13  }
  0x17   : > { %1094 = vmatprep.subr.mxu0 %v308_v6  ;;  %1113 = vmatpush3.msra.mxu1 %v486_v5  ;;  %v479_v21 = vld [vmem:[%s1667_s3 + $0x30] sm:$0xff]  ;;  %v478_v22 = vld [vmem:[%s1667_s3 + $0x28] sm:$0xff]  ;;  %v477_v23 = vld [vmem:[%s1667_s3 + $0x20] sm:$0xff] }
  0x18   : > { %1095 = vmatpush3.msra.mxu0 %v308_v6  ;;  %1096 = vmatprep.mubr.msk.f32.mxu0 %vm319_vm0, %v300_v8  ;;  %v476_v24 = vld [vmem:[%s1667_s3 + $0x18] sm:$0xff]  ;;  %v475_v25 = vld [vmem:[%s1667_s3 + $0x10] sm:$0xff]  ;;  %v474_v26 = vld [vmem:[%s1667_s3 + $0x8] sm:$0xff] }
  0x19   : > { %1097 = vmatmul.mubr.msk.f32.vlgmr.msra.gmra.mxu0 %vm319_vm0, %v301_v9  ;;  %1114 = vmatprep.subr.mxu1 %v485_v7  ;;  %v473_v27 = vld [vmem:[%s1667_s3] sm:$0xff]  ;;  %v624_v28 = vld [vmem:[%s1669_s5 + $0x78] sm:$0xff]  ;;  %v623_v29 = vld [vmem:[%s1669_s5 + $0x70] sm:$0xff] }
  0x1a   : > { %1099 = vmatprep.mubr.msk.f32.mxu0 %vm319_vm0, %v302_v10  ;;  %1115 = vmatpush3.msra.mxu1 %v485_v7  ;;  %v622_v30 = vld [vmem:[%s1669_s5 + $0x68] sm:$0xff]  ;;  %v621_v31 = vld [vmem:[%s1669_s5 + $0x60] sm:$0xff]  ;;  %v620_v32 = vld [vmem:[%s1669_s5 + $0x58] sm:$0xff] }
  0x1b   : > { %1116 = vmatprep.subr.mxu1 %v484_v11  ;;  %1152 = vmatprep.subr.mxu0 %v624_v28  ;;  %v619_v33 = vld [vmem:[%s1669_s5 + $0x50] sm:$0xff]  ;;  %v618_v34 = vld [vmem:[%s1669_s5 + $0x48] sm:$0xff]  ;;  %v617_v35 = vld [vmem:[%s1669_s5 + $0x40] sm:$0xff] }
  0x1c   : > { %1117 = vmatpush3.msra.mxu1 %v484_v11  ;;  %1153 = vmatpush3.msra.mxu0 %v624_v28  ;;  %v616_v36 = vld [vmem:[%s1669_s5 + $0x38] sm:$0xff]  ;;  %v615_v37 = vld [vmem:[%s1669_s5 + $0x30] sm:$0xff]  ;;  %v614_v38 = vld [vmem:[%s1669_s5 + $0x28] sm:$0xff] }
  0x1d   : > { %1100 = vmatmul.mubr.msk.f32.gmra.mxu0 %vm319_vm0, %v303_v12  ;;  %1118 = vmatprep.subr.mxu1 %v483_v13  ;;  %v613_v39 = vld [vmem:[%s1669_s5 + $0x20] sm:$0xff]  ;;  %v612_v9 = vld [vmem:[%s1669_s5 + $0x18] sm:$0xff]  ;;  %v611_v10 = vld [vmem:[%s1669_s5 + $0x10] sm:$0xff] }
  0x1e   : > { %1102 = vmatprep.mubr.msk.f32.mxu0 %vm319_vm0, %v304_v14  ;;  %1119 = vmatpush3.msra.mxu1 %v483_v13  ;;  %v997_v40 = vld [vmem:[%s1666_s2] ss:$0 sm:$0xff]  ;;  %v610_v11 = vld [vmem:[%s1669_s5 + $0x8] sm:$0xff] }
  0x1f   : > { %1120 = vmatprep.subr.mxu1 %v482_v15  ;;  %1154 = vmatprep.subr.mxu0 %v623_v29  ;;  %v609_v12 = vld [vmem:[%s1669_s5] sm:$0xff] }
  0x20   : > { %1121 = vmatpush3.msra.mxu1 %v482_v15  ;;  %1155 = vmatpush3.msra.mxu0 %v623_v29  ;;  %v1006_v13 = vld [vmem:[%s1668_s4] ss:$0 sm:$0xff] }
  0x21   : > { %1103 = vmatmul.mubr.msk.f32.gmra.mxu0 %vm319_vm0, %v305_v16  ;;  %1122 = vmatprep.subr.mxu1 %v481_v17 }
  0x22   : > { %1105 = vmatprep.mubr.msk.f32.mxu0 %vm319_vm0, %v306_v18  ;;  %1123 = vmatpush3.msra.mxu1 %v481_v17 }
  0x23   : > { %1124 = vmatprep.subr.mxu1 %v480_v19  ;;  %1156 = vmatprep.subr.mxu0 %v622_v30 }
  0x24   : > { %1125 = vmatpush3.msra.mxu1 %v480_v19  ;;  %1157 = vmatpush3.msra.mxu0 %v622_v30 }
  0x25   : > { %1106 = vmatmul.mubr.msk.f32.gmra.mxu0 %vm319_vm0, %v307_v20  ;;  %1126 = vmatprep.subr.mxu1 %v479_v21 }
  0x26   : > { %1127 = vmatpush3.msra.mxu1 %v479_v21  ;;  %1158 = vmatprep.subr.mxu0 %v621_v31 }
  0x27   : > { %1128 = vmatprep.subr.mxu1 %v478_v22  ;;  %1159 = vmatpush3.msra.mxu0 %v621_v31 }
  0x28   : > { %1129 = vmatpush3.msra.mxu1 %v478_v22  ;;  %1160 = vmatprep.subr.mxu0 %v620_v32 }
  0x29   : > { %1130 = vmatprep.subr.mxu1 %v477_v23  ;;  %1161 = vmatpush3.msra.mxu0 %v620_v32 }
  0x2a   : > { %1131 = vmatpush3.msra.mxu1 %v477_v23  ;;  %1162 = vmatprep.subr.mxu0 %v619_v33 }
  0x2b   : > { %1132 = vmatprep.subr.mxu1 %v476_v24  ;;  %1163 = vmatpush3.msra.mxu0 %v619_v33 }
  0x2c   : > { %1133 = vmatpush3.msra.mxu1 %v476_v24  ;;  %1164 = vmatprep.subr.mxu0 %v618_v34 }
  0x2d   : > { %1134 = vmatprep.subr.mxu1 %v475_v25  ;;  %1165 = vmatpush3.msra.mxu0 %v618_v34 }
  0x2e   : > { %1135 = vmatpush3.msra.mxu1 %v475_v25  ;;  %1166 = vmatprep.subr.mxu0 %v617_v35 }
  0x2f   : > { %1136 = vmatprep.subr.mxu1 %v474_v26  ;;  %1167 = vmatpush3.msra.mxu0 %v617_v35 }
  0x30   : > { %1137 = vmatpush3.msra.mxu1 %v474_v26  ;;  %1168 = vmatprep.subr.mxu0 %v616_v36 }
  0x31   : > { %1138 = vmatprep.subr.mxu1 %v473_v27  ;;  %1169 = vmatpush3.msra.mxu0 %v616_v36 }
  0x32   : > { %1139 = vmatpush3.msra.mxu1 %v473_v27  ;;  %1170 = vmatprep.subr.mxu0 %v615_v37 }
  0x33   : > { %1171 = vmatpush3.msra.mxu0 %v615_v37 }
  0x34   : > { %1172 = vmatprep.subr.mxu0 %v614_v38 }
  0x35   : > { %1173 = vmatpush3.msra.mxu0 %v614_v38  ;;  %v1007_v38 = vld [vmem:[%s1670_s6] ss:$0 sm:$0xff] }
  0x36   : > { %1174 = vmatprep.subr.mxu0 %v613_v39 }
  0x37   : > { %1175 = vmatpush3.msra.mxu0 %v613_v39 }
  0x38   : > { %1176 = vmatprep.subr.mxu0 %v612_v9 }
  0x39   : > { %1177 = vmatpush3.msra.mxu0 %v612_v9 }
  0x3a   : > { %1178 = vmatprep.subr.mxu0 %v611_v10 }
  0x3b   : > { %1179 = vmatpush3.msra.mxu0 %v611_v10 }
  0x3c   : > { %1180 = vmatprep.subr.mxu0 %v610_v11 }
  0x3d   : > { %1181 = vmatpush3.msra.mxu0 %v610_v11 }
  0x3e   : > { %1182 = vmatprep.subr.mxu0 %v609_v12 }
  0x3f   : > { %1183 = vmatpush3.msra.mxu0 %v609_v12 }
  0xd9   : > { %v1098_v41 = vpop.f32.mrf.mxu0 }
  0xda   : > { %v416_v42 = vadd.f32 %v1098_v41, %v997_v40 }
  0xdb   : > { %v410_v43 = vpop.f32.mrf.mxu0 }
  0xdc   : > { %v411_v44 = vadd.f32 %v997_v40, %v410_v43  ;;  %v458_v45 = vmul.f32 0.01, %v416_v42  ;;  %vm450_vm2 = vcmp.gt.f32.partialorder %v416_v42, 0.0 }
  0xdd   : > { %v1101_v46 = vpop.f32.mrf.mxu0 }
  0xde   : > { %v426_v47 = vadd.f32 %v1101_v46, %v997_v40  ;;  %vm449_vm1 = vcmp.gt.f32.partialorder %v411_v44, 0.0  ;;  %v457_v48 = vmul.f32 0.01, %v411_v44  ;;  %v466_v54 = vsel %vm450_vm2, %v416_v42, %v458_v45 }
  0xdf   : > { %v420_v49 = vpop.f32.mrf.mxu0 }
  0xe0   : > { %v421_v50 = vadd.f32 %v997_v40, %v420_v49  ;;  %v465_v51 = vsel %vm449_vm1, %v411_v44, %v457_v48  ;;  %v460_v52 = vmul.f32 0.01, %v426_v47  ;;  %vm452_vm4 = vcmp.gt.f32.partialorder %v426_v47, 0.0 }
  0xe1   : > { %v1104_v53 = vpop.f32.mrf.mxu0  ;;  %1140 = vmatprep.mubr.f32.mxu1 %v465_v51 }
  0xe2   : > { %v459_v55 = vmul.f32 0.01, %v421_v50  ;;  %v436_v56 = vadd.f32 %v1104_v53, %v997_v40  ;;  %1141 = vmatmul.mubr.f32.vlgmr.msra.gmra.mxu1 %v466_v54  ;;  %vm451_vm3 = vcmp.gt.f32.partialorder %v421_v50, 0.0  ;;  %v468_v62 = vsel %vm452_vm4, %v426_v47, %v460_v52 }
  0xe3   : > { %v430_v57 = vpop.f32.mrf.mxu0 }
  0xe4   : > { %v431_v58 = vadd.f32 %v997_v40, %v430_v57  ;;  %v467_v59 = vsel %vm451_vm3, %v421_v50, %v459_v55  ;;  %v462_v60 = vmul.f32 0.01, %v436_v56  ;;  %vm454_vm6 = vcmp.gt.f32.partialorder %v436_v56, 0.0 }
  0xe5   : > { %v1107_v61 = vpop.f32.mrf.mxu0  ;;  %1143 = vmatprep.mubr.f32.mxu1 %v467_v59 }
  0xe6   : > { %v461_v63 = vmul.f32 0.01, %v431_v58  ;;  %v446_v0 = vadd.f32 %v1107_v61, %v997_v40  ;;  %1144 = vmatmul.mubr.f32.gmra.mxu1 %v468_v62  ;;  %vm453_vm5 = vcmp.gt.f32.partialorder %v431_v58, 0.0  ;;  %v470_v5 = vsel %vm454_vm6, %v436_v56, %v462_v60 }
  0xe7   : > { %v440_v1 = vpop.f32.mrf.mxu0 }
  0xe8   : > { %v441_v2 = vadd.f32 %v997_v40, %v440_v1  ;;  %v469_v3 = vsel %vm453_vm5, %v431_v58, %v461_v63  ;;  %v464_v4 = vmul.f32 0.01, %v446_v0  ;;  %vm456_vm8 = vcmp.gt.f32.partialorder %v446_v0, 0.0 }
  0xe9   : > { %1146 = vmatprep.mubr.f32.mxu1 %v469_v3 }
  0xea   : > { %v463_v6 = vmul.f32 0.01, %v441_v2  ;;  %1147 = vmatmul.mubr.f32.gmra.mxu1 %v470_v5  ;;  %vm455_vm7 = vcmp.gt.f32.partialorder %v441_v2, 0.0  ;;  %v472_v8 = vsel %vm456_vm8, %v446_v0, %v464_v4 }
  0xec   : > { %v471_v7 = vsel %vm455_vm7, %v441_v2, %v463_v6 }
  0xed   : > { %1149 = vmatprep.mubr.f32.mxu1 %v471_v7 }
  0xee   : > { %1150 = vmatmul.mubr.f32.gmra.mxu1 %v472_v8 }
 0x1a2   : > { %v1142_v14 = vpop.f32.mrf.mxu1 }
 0x1a3   : > { %v568_v15 = vadd.f32 %v1142_v14, %v1006_v13 }
 0x1a4   : > { %v562_v16 = vpop.f32.mrf.mxu1 }
 0x1a5   : > { %v563_v17 = vadd.f32 %v1006_v13, %v562_v16  ;;  %v602_v20 = vmax.f32 %v568_v15, 0.0 }
 0x1a6   : > { %v1145_v18 = vpop.f32.mrf.mxu1 }
 0x1a7   : > { %v601_v19 = vmax.f32 %v563_v17, 0.0  ;;  %v578_v21 = vadd.f32 %v1145_v18, %v1006_v13 }
 0x1a8   : > { %v572_v22 = vpop.f32.mrf.mxu1 }
 0x1a9   : > { %v573_v23 = vadd.f32 %v1006_v13, %v572_v22  ;;  %1184 = vmatprep.mubr.f32.mxu0 %v601_v19  ;;  %v604_v26 = vmax.f32 %v578_v21, 0.0 }
 0x1aa   : > { %v1148_v24 = vpop.f32.mrf.mxu1  ;;  %1185 = vmatmul.mubr.f32.vlgmr.msra.gmra.mxu0 %v602_v20 }
 0x1ab   : > { %v603_v25 = vmax.f32 %v573_v23, 0.0  ;;  %v588_v27 = vadd.f32 %v1148_v24, %v1006_v13 }
 0x1ac   : > { %v582_v28 = vpop.f32.mrf.mxu1 }
 0x1ad   : > { %v583_v29 = vadd.f32 %v1006_v13, %v582_v28  ;;  %1187 = vmatprep.mubr.f32.mxu0 %v603_v25  ;;  %v606_v32 = vmax.f32 %v588_v27, 0.0 }
 0x1ae   : > { %v1151_v30 = vpop.f32.mrf.mxu1  ;;  %1188 = vmatmul.mubr.f32.gmra.mxu0 %v604_v26 }
 0x1af   : > { %v605_v31 = vmax.f32 %v583_v29, 0.0  ;;  %v598_v33 = vadd.f32 %v1151_v30, %v1006_v13 }
 0x1b0   : > { %v592_v34 = vpop.f32.mrf.mxu1 }
 0x1b1   : > { %v593_v35 = vadd.f32 %v1006_v13, %v592_v34  ;;  %1190 = vmatprep.mubr.f32.mxu0 %v605_v31  ;;  %v608_v37 = vmax.f32 %v598_v33, 0.0 }
 0x1b2   : > { %1191 = vmatmul.mubr.f32.gmra.mxu0 %v606_v32 }
 0x1b3   : > { %v607_v36 = vmax.f32 %v593_v35, 0.0 }
 0x1b5   : > { %1193 = vmatprep.mubr.f32.mxu0 %v607_v36 }
 0x1b6   : > { %1194 = vmatmul.mubr.f32.gmra.mxu0 %v608_v37 }
 0x26a   : > { %v1186_v39 = vpop.f32.mrf.mxu0 }
 0x26b   : > { %v704_v40 = vadd.f32 %v1186_v39, %v1007_v38 }
 0x26c   : > { %v698_v41 = vpop.f32.mrf.mxu0 }
 0x26d   : > { %739 = vst.msk [vmem:[%s1585_s12 + $0x8] sm:$0xff] %vm737_vm9, %v704_v40  ;;  %v699_v42 = vadd.f32 %v1007_v38, %v698_v41 }
 0x26e   : > { %v1189_v43 = vpop.f32.mrf.mxu0 }
 0x26f   : > { %738 = vst.msk [vmem:[%s1585_s12] sm:$0xff] %vm737_vm9, %v699_v42  ;;  %v714_v44 = vadd.f32 %v1189_v43, %v1007_v38 }
 0x270   : > { %v708_v45 = vpop.f32.mrf.mxu0 }
 0x271   : > { %741 = vst.msk [vmem:[%s1585_s12 + $0x18] sm:$0xff] %vm737_vm9, %v714_v44  ;;  %v709_v46 = vadd.f32 %v1007_v38, %v708_v45 }
 0x272   : > { %v1192_v47 = vpop.f32.mrf.mxu0 }
 0x273   : > { %740 = vst.msk [vmem:[%s1585_s12 + $0x10] sm:$0xff] %vm737_vm9, %v709_v46  ;;  %v724_v48 = vadd.f32 %v1192_v47, %v1007_v38 }
 0x274   : > { %v718_v49 = vpop.f32.mrf.mxu0 }
 0x275   : > { %743 = vst.msk [vmem:[%s1585_s12 + $0x28] sm:$0xff] %vm737_vm9, %v724_v48  ;;  %v719_v50 = vadd.f32 %v1007_v38, %v718_v49 }
 0x276   : > { %v1195_v51 = vpop.f32.mrf.mxu0 }
 0x277   : > { %742 = vst.msk [vmem:[%s1585_s12 + $0x20] sm:$0xff] %vm737_vm9, %v719_v50  ;;  %v734_v52 = vadd.f32 %v1195_v51, %v1007_v38  ;;  %752 = sbr.rel (!%p1437_p4) target bundleno = 675 (0x2a3), region = 52 }
 0x278   : > { %v728_v53 = vpop.f32.mrf.mxu0 }
 0x279   : > { %745 = vst.msk [vmem:[%s1585_s12 + $0x38] sm:$0xff] %vm737_vm9, %v734_v52  ;;  %v729_v54 = vadd.f32 %v1007_v38, %v728_v53 }
 0x27b   : > { %744 = vst.msk [vmem:[%s1585_s12 + $0x30] sm:$0xff] %vm737_vm9, %v729_v54 }
 0x27c   : > { %s1680_s24 = smov (!%p755_p8, %s754_s24), 8 }
 0x27d   : > { %s1010_s21 = sshll.u32 %s1680_s24, 7 }
 0x27e   : > { %p1013_p9 = scmp.eq.s32.totalorder %s1010_s21, 0 }
 0x27f   : > { %s1616_s22 = sshrl.u32 (!%p1013_p9), %s1680_s24, 3 }
 0x280   : > { %763 = sbr.rel (%p1013_p9) target bundleno = 675 (0x2a3), region = 56  ;;  %p1014_p10 = scmp.le.s32.totalorder (!%p1013_p9), %s1616_s22, 0 }
 0x285   : > { %946 = sbr.rel (%p1014_p10) target bundleno = 658 (0x292), region = 132  ;;  %s1673_s27 = smov (!%p1014_p10), %s1610_s20 }
 0x286   : > { %s1674_s9 = smov (!%p1014_p10), %s1585_s12  ;;  %s1625_s14 = smov (!%p1014_p10), 0  }
 0x287   : > { %s1627_s23 = smov (!%p1014_p10), 0  }
 0x28a LB: >> { %v840_v55 = vld [vmem:[%s1346_s9] sm:$0xff]  ;;  %v842_v56 = vld [vmem:[%s1346_s9 + $0x8] sm:$0xff]  ;;  %v844_v57 = vld [vmem:[%s1346_s9 + $0x10] sm:$0xff]  ;;  %s856_s26 = sadd.s32 1, %s1350_s14  ;;  %s834_s23 = sadd.s32 1, %s1354_s23   ;;  %s1354_s23 = sphi %s1627_s23, %s834_s23   ;;  %s1350_s14 = sphi %s1625_s14, %s1675_s14   ;;  %s1346_s9 = sphi %s1674_s9, %s861_s9   ;;  %s1342_s27 = sphi %s1673_s27, %s862_s27  }
 0x28b   : >> { %841 = vst [vmem:[%s1342_s27] sm:$0xff] %v840_v55  ;;  %843 = vst [vmem:[%s1342_s27 + $0x8] sm:$0xff] %v842_v56  ;;  %v846_v58 = vld [vmem:[%s1346_s9 + $0x18] sm:$0xff]  ;;  %v848_v59 = vld [vmem:[%s1346_s9 + $0x20] sm:$0xff]  ;;  %p857_p11 = scmp.ge.s32.totalorder %s856_s26, %s1616_s22  ;;  %p833_p12 = scmp.ge.s32.totalorder %s834_s23, %s1616_s22 }
 0x28c   : >> { %845 = vst [vmem:[%s1342_s27 + $0x10] sm:$0xff] %v844_v57  ;;  %v850_v60 = vld [vmem:[%s1346_s9 + $0x28] sm:$0xff]  ;;  %847 = vst [vmem:[%s1342_s27 + $0x18] sm:$0xff] %v846_v58  ;;  %v852_v61 = vld [vmem:[%s1346_s9 + $0x30] sm:$0xff] }
 0x28d   : >> { %849 = vst [vmem:[%s1342_s27 + $0x20] sm:$0xff] %v848_v59  ;;  %851 = vst [vmem:[%s1342_s27 + $0x28] sm:$0xff] %v850_v60  ;;  %v854_v62 = vld [vmem:[%s1346_s9 + $0x38] sm:$0xff]  ;;  %s1682_s26 = smov (%p857_p11, %s856_s26), 0  ;;  %836 = sbr.rel (!%p833_p12) target bundleno = 650 (0x28a), region = 138 }
 0x28e   : >> { %853 = vst [vmem:[%s1342_s27 + $0x30] sm:$0xff] %v852_v61  ;;  %855 = vst [vmem:[%s1342_s27 + $0x38] sm:$0xff] %v854_v62  ;;  %s1015_s29 = sshll.u32 %s1682_s26, 6  ;;  %s1675_s14 = smov %s1682_s26 }
 0x28f   : >> { %s861_s9 = scalar_lea.vmem %s1585_s12, %s1015_s29 [#allocation2]   ;;  %s862_s27 = scalar_lea.vmem %s1610_s20, %s1015_s29  }
 0x292 PF: > { %s1646_s30 = sand.u32 7, %s1680_s24   ;;  %s1026_s10 = sshll.u32 %s1616_s22, 6 }
 0x293   : > { %s867_s11 = scalar_lea.vmem %s1585_s12, %s1026_s10 [#allocation2]   ;;  %s869_s13 = scalar_lea.vmem %s1610_s20, %s1026_s10  }
 0x294   : > { %p1020_p13 = scmp.le.s32.totalorder %s1646_s30, 0 }
 0x295   : > { %s1356_s15 = smov (!%p1020_p13), %s869_s13   ;;  %s1360_s16 = smov (!%p1020_p13), %s867_s11  }
 0x296   : > { %960 = sbr.rel (%p1020_p13) target bundleno = 675 (0x2a3), region = 143  ;;  %s1364_s17 = smov (!%p1020_p13), 0  }
 0x297   : > { %s1368_s18 = smov (!%p1020_p13), 0  }
 0x29b LB: >> { %v879_v63 = vld [vmem:[%s1362_s16] sm:$0xff]  ;;  %s881_s24 = sadd.s32 1, %s1366_s17  ;;  %s873_s18 = sadd.s32 1, %s1370_s18   ;;  %s1370_s18 = sphi %s1368_s18, %s873_s18   ;;  %s1366_s17 = sphi %s1364_s17, %s1365_s17   ;;  %s1362_s16 = sphi %s1360_s16, %s886_s16   ;;  %s1358_s15 = sphi %s1356_s15, %s887_s15  }
 0x29c   : >> { %880 = vst [vmem:[%s1358_s15] sm:$0xff] %v879_v63  ;;  %p882_p0 = scmp.ge.s32.totalorder %s881_s24, %s1646_s30  ;;  %p872_p1 = scmp.ge.s32.totalorder %s873_s18, %s1646_s30 }
 0x29e   : >> { %s1684_s24 = smov (%p882_p0, %s881_s24), 0  ;;  %875 = sbr.rel (!%p872_p1) target bundleno = 667 (0x29b), region = 149 }
 0x29f   : >> { %s1021_s12 = sshll.u32 %s1684_s24, 3  ;;  %s1365_s17 = smov %s1684_s24  }
 0x2a0   : >> { %s886_s16 = scalar_lea.vmem %s867_s11, %s1021_s12 [#allocation2]   ;;  %s887_s15 = scalar_lea.vmem %s869_s13, %s1021_s12  }
 0x2a3 PF: > { %p14_p2 = scmp.ge.s32.totalorder %s1427_s28, 6   ;;  %s1676_s24 = smov %s1334_s25 }
 0x2a4   : > { %s1677_s25 = smov %s1435_s8  ;;  %s1678_s26 = smov %s1427_s28 }
 0x2a5   :  { %16 = sbr.rel (!%p14_p2) target bundleno = 2 (0x2), region = 160 }

</bundles_post_ra>
